<compile_context>
chip_gen: v5e
topology: v5e:2x2
jax: 0.10.0
libtpu: 0.0.40
codegen_flags: <defaults>
</compile_context>

<pallas_src>
import jax
import jax.numpy as jnp
from jax.experimental import pallas as pl
from jax.experimental.pallas import tpu as pltpu


def simplenet_kernel(x_ref, w1_ref, b1_ref, w2_ref, b2_ref, o_ref):
    # fc1: bf16 operands on the MXU, f32 accumulate; bias + ReLU stay in f32.
    x_bf = x_ref[...].astype(jnp.bfloat16)
    h = jnp.dot(x_bf, w1_ref[...], preferred_element_type=jnp.float32)
    h = jnp.maximum(h + b1_ref[...], 0.0)          # b1 is (1, hidden) -> broadcasts over batch

    # Dropout(p=0.3): module evaluated in inference mode -> identity.
    # TODO(synk): training-mode dropout would use pltpu.prng_seed / pltpu.prng_random_bits.

    # fc2 + bias (bf16 operands, f32 accumulate).
    y = jnp.dot(h.astype(jnp.bfloat16), w2_ref[...], preferred_element_type=jnp.float32)
    y = y + b2_ref[...]                            # b2 is (1, out_dim) -> broadcasts over batch

    # Exact, numerically stable sigmoid:
    #   e = exp(-|y|)  (EUP), r = 1/(1+e) exact,  sigmoid(y) = r if y >= 0 else e*r
    e = jnp.exp(-jnp.abs(y))
    r = pl.reciprocal(1.0 + e)                     # exact (approx=False)
    o_ref[...] = jnp.where(y >= 0.0, r, e * r).astype(o_ref.dtype)


def init_params(key, input_dim, hidden_dim, output_dim):
    """Deterministic synthetic init (mimics nn.Linear's uniform(-1/sqrt(fan_in), 1/sqrt(fan_in)))."""
    k1, k2, k3, k4 = jax.random.split(key, 4)
    bound1 = 1.0 / (input_dim ** 0.5)
    bound2 = 1.0 / (hidden_dim ** 0.5)
    w1 = jax.random.uniform(k1, (input_dim, hidden_dim), jnp.float32, -bound1, bound1)
    b1 = jax.random.uniform(k2, (hidden_dim,), jnp.float32, -bound1, bound1)
    w2 = jax.random.uniform(k3, (hidden_dim, output_dim), jnp.float32, -bound2, bound2)
    b2 = jax.random.uniform(k4, (output_dim,), jnp.float32, -bound2, bound2)
    return w1, b1, w2, b2


def prepare_params(w1, b1, w2, b2):
    """One-time parameter prep, hoisted out of the per-call forward:
    weights in bf16 (MXU-native, half the DMA/VMEM bytes), biases as (1, n) f32 rows."""
    return (w1.astype(jnp.bfloat16),
            b1.reshape(1, -1).astype(jnp.float32),
            w2.astype(jnp.bfloat16),
            b2.reshape(1, -1).astype(jnp.float32))


def simplenet_forward(x, params, *, max_tile_b=512):
    w1, b1, w2, b2 = params
    B, in_dim = x.shape
    hid = w1.shape[1]
    out_dim = w2.shape[1]

    if B <= max_tile_b:
        # Single batch tile: grid=(1,), no batch padding, no post-kernel slice.
        tile_b, b_p = B, B
    else:
        # Large batch: stream 512-row tiles (multiple of the f32 sublane count 8).
        tile_b = max_tile_b
        b_p = pl.cdiv(B, tile_b) * tile_b
        if b_p != B:
            x = jnp.pad(x, ((0, b_p - B), (0, 0)))

    steps = b_p // tile_b
    # Only shard across TensorCores (v7x) when there are >= 2 sizeable tiles to amortize
    # the per-step / cross-core overhead; a single-tile grid runs on one TC.
    dim_sem = ("parallel",) if steps > 1 else ("arbitrary",)

    out = pl.pallas_call(
        simplenet_kernel,
        out_shape=jax.ShapeDtypeStruct((b_p, out_dim), jnp.float32),
        grid=(steps,),
        in_specs=[
            # x: tiled over the batch grid; last dim equals the full array dim (no K padding).
            pl.BlockSpec((tile_b, in_dim), lambda i: (i, 0)),
            # weights / biases: constant index_map -> DMA'd once, VMEM-resident across steps.
            pl.BlockSpec((in_dim, hid), lambda i: (0, 0)),
            pl.BlockSpec((1, hid), lambda i: (0, 0)),
            pl.BlockSpec((hid, out_dim), lambda i: (0, 0)),
            pl.BlockSpec((1, out_dim), lambda i: (0, 0)),
        ],
        # Unpadded (tile_b, out_dim) output block (legal: full-dim last axis). The 8-wide masked
        # store costs far less than 16x the write bytes + a slice HLO at this output size.
        out_specs=pl.BlockSpec((tile_b, out_dim), lambda i: (i, 0)),
        compiler_params=pltpu.CompilerParams(dimension_semantics=dim_sem),
        # Default scoped VMEM limit is ample: live buffers here are a few hundred KiB.
    )(x, w1, b1, w2, b2)

    return out[:B] if b_p != B else out


if __name__ == "__main__":
    batch, input_dim, hidden_dim, output_dim = 128, 16, 32, 8

    key = jax.random.PRNGKey(0)
    kx, kp = jax.random.split(key)
    x = jax.random.normal(kx, (batch, input_dim), jnp.float32)

    raw = init_params(kp, input_dim, hidden_dim, output_dim)      # f32, PyTorch-like shapes
    params = prepare_params(*raw)                                 # one-time prep (bf16 weights)

    fwd = jax.jit(simplenet_forward)
    out = fwd(x, params)
    jax.block_until_ready(out)

    # (1) Tight check against a JAX reference using the same bf16 operand casts as the kernel.
    w1b, b1r, w2b, b2r = params
    h_ref = jnp.maximum(
        jnp.dot(x.astype(jnp.bfloat16), w1b, preferred_element_type=jnp.float32) + b1r, 0.0)
    ref_bf = jax.nn.sigmoid(
        jnp.dot(h_ref.astype(jnp.bfloat16), w2b, preferred_element_type=jnp.float32) + b2r)
    # (2) Loose check against the pure-f32 module math (tolerance covers bf16 matmul operands).
    w1f, b1f, w2f, b2f = raw
    ref_f32 = jax.nn.sigmoid(jnp.maximum(x @ w1f + b1f, 0.0) @ w2f + b2f)

    assert out.shape == (batch, output_dim)
    assert jnp.allclose(out, ref_bf, atol=1e-4, rtol=1e-4), float(jnp.max(jnp.abs(out - ref_bf)))
    assert jnp.allclose(out, ref_f32, atol=1e-2, rtol=1e-2), float(jnp.max(jnp.abs(out - ref_f32)))

    print("KERNEL_OK")
</pallas_src>

<mosaic_0001>
module attributes {stable_mosaic.version = 11 : i64} {
  func.func @simplenet_kernel(%arg0: i32, %arg1: memref<128x16xf32, #tpu.memory_space<vmem>>, %arg2: memref<16x32xbf16, #tpu.memory_space<vmem>>, %arg3: memref<1x32xf32, #tpu.memory_space<vmem>>, %arg4: memref<32x8xbf16, #tpu.memory_space<vmem>>, %arg5: memref<1x8xf32, #tpu.memory_space<vmem>>, %arg6: memref<128x8xf32, #tpu.memory_space<vmem>>) attributes {dimension_semantics = [#tpu.dimension_semantics<arbitrary>], iteration_bounds = array<i64: 1>, scalar_prefetch = 0 : i64, scratch_operands = 0 : i64, tpu.core_type = #tpu.core_type<tc>, window_params = [{transform_indices = @transform_0, window_bounds = array<i64: 128, 16>}, {pipeline_mode = #tpu.pipeline_mode<synchronous>, transform_indices = @transform_1, window_bounds = array<i64: 16, 32>}, {pipeline_mode = #tpu.pipeline_mode<synchronous>, transform_indices = @transform_2, window_bounds = array<i64: 1, 32>}, {pipeline_mode = #tpu.pipeline_mode<synchronous>, transform_indices = @transform_3, window_bounds = array<i64: 32, 8>}, {pipeline_mode = #tpu.pipeline_mode<synchronous>, transform_indices = @transform_4, window_bounds = array<i64: 1, 8>}, {transform_indices = @transform_5, window_bounds = array<i64: 128, 8>}]} {
    %c0 = arith.constant 0 : index
    %c0_0 = arith.constant 0 : index
    %0 = vector.load %arg1[%c0, %c0_0] : memref<128x16xf32, #tpu.memory_space<vmem>>, vector<128x16xf32>
    %1 = arith.truncf %0 : vector<128x16xf32> to vector<128x16xbf16>
    %c0_1 = arith.constant 0 : index
    %c0_2 = arith.constant 0 : index
    %2 = vector.load %arg2[%c0_1, %c0_2] : memref<16x32xbf16, #tpu.memory_space<vmem>>, vector<16x32xbf16>
    %cst = arith.constant dense<0.000000e+00> : vector<128x32xf32>
    %3 = tpu.matmul %1, %2, %cst {dimension_numbers = #tpu.dot_dimension_numbers<[1], [0], [0], [1], [0, 0, 1, 1], [], []>} : vector<128x16xbf16>, vector<16x32xbf16>, vector<128x32xf32> -> vector<128x32xf32>
    %c0_3 = arith.constant 0 : index
    %c0_4 = arith.constant 0 : index
    %4 = vector.load %arg3[%c0_3, %c0_4] : memref<1x32xf32, #tpu.memory_space<vmem>>, vector<1x32xf32>
    %5 = vector.broadcast %4 : vector<1x32xf32> to vector<128x32xf32>
    %6 = arith.addf %3, %5 : vector<128x32xf32>
    %cst_5 = arith.constant 0.000000e+00 : f32
    %7 = vector.broadcast %cst_5 : f32 to vector<128x32xf32>
    %8 = arith.maximumf %6, %7 : vector<128x32xf32>
    %9 = arith.truncf %8 : vector<128x32xf32> to vector<128x32xbf16>
    %c0_6 = arith.constant 0 : index
    %c0_7 = arith.constant 0 : index
    %10 = vector.load %arg4[%c0_6, %c0_7] : memref<32x8xbf16, #tpu.memory_space<vmem>>, vector<32x8xbf16>
    %cst_8 = arith.constant dense<0.000000e+00> : vector<128x8xf32>
    %11 = tpu.matmul %9, %10, %cst_8 {dimension_numbers = #tpu.dot_dimension_numbers<[1], [0], [0], [1], [0, 0, 1, 1], [], []>} : vector<128x32xbf16>, vector<32x8xbf16>, vector<128x8xf32> -> vector<128x8xf32>
    %c0_9 = arith.constant 0 : index
    %c0_10 = arith.constant 0 : index
    %12 = vector.load %arg5[%c0_9, %c0_10] : memref<1x8xf32, #tpu.memory_space<vmem>>, vector<1x8xf32>
    %13 = vector.broadcast %12 : vector<1x8xf32> to vector<128x8xf32>
    %14 = arith.addf %11, %13 : vector<128x8xf32>
    %15 = math.absf %14 : vector<128x8xf32>
    %cst_11 = arith.constant 0.000000e+00 : f32
    %16 = vector.broadcast %cst_11 : f32 to vector<128x8xf32>
    %17 = arith.subf %16, %15 : vector<128x8xf32>
    %18 = math.exp %17 : vector<128x8xf32>
    %cst_12 = arith.constant 1.000000e+00 : f32
    %19 = vector.broadcast %cst_12 : f32 to vector<128x8xf32>
    %20 = arith.addf %19, %18 : vector<128x8xf32>
    %21 = tpu.reciprocal %20 : vector<128x8xf32> -> vector<128x8xf32>
    %cst_13 = arith.constant 0.000000e+00 : f32
    %22 = vector.broadcast %cst_13 : f32 to vector<128x8xf32>
    %23 = arith.cmpf oge, %14, %22 : vector<128x8xf32>
    %24 = arith.mulf %18, %21 : vector<128x8xf32>
    %25 = arith.select %23, %21, %24 : vector<128x8xi1>, vector<128x8xf32>
    %c0_14 = arith.constant 0 : index
    %c0_15 = arith.constant 0 : index
    %26 = vector.load %arg6[%c0_14, %c0_15] : memref<128x8xf32, #tpu.memory_space<vmem>>, vector<128x8xf32>
    tpu.vector_store %arg6[%c0_14, %c0_15], %25 {strides = array<i32>} : memref<128x8xf32, #tpu.memory_space<vmem>>, vector<128x8xf32>,
    return
  }
  func.func @transform_0(%arg0: i32) -> (i32, i32) {
    %c0_i32 = arith.constant 0 : i32
    %c0_i32_0 = arith.constant 0 : i32
    return %arg0, %c0_i32 : i32, i32
  }
  func.func @transform_1(%arg0: i32) -> (i32, i32) {
    %c0_i32 = arith.constant 0 : i32
    %c0_i32_0 = arith.constant 0 : i32
    %c0_i32_1 = arith.constant 0 : i32
    return %c0_i32, %c0_i32_0 : i32, i32
  }
  func.func @transform_2(%arg0: i32) -> (i32, i32) {
    %c0_i32 = arith.constant 0 : i32
    %c0_i32_0 = arith.constant 0 : i32
    %c0_i32_1 = arith.constant 0 : i32
    return %c0_i32, %c0_i32_0 : i32, i32
  }
  func.func @transform_3(%arg0: i32) -> (i32, i32) {
    %c0_i32 = arith.constant 0 : i32
    %c0_i32_0 = arith.constant 0 : i32
    %c0_i32_1 = arith.constant 0 : i32
    return %c0_i32, %c0_i32_0 : i32, i32
  }
  func.func @transform_4(%arg0: i32) -> (i32, i32) {
    %c0_i32 = arith.constant 0 : i32
    %c0_i32_0 = arith.constant 0 : i32
    %c0_i32_1 = arith.constant 0 : i32
    return %c0_i32, %c0_i32_0 : i32, i32
  }
  func.func @transform_5(%arg0: i32) -> (i32, i32) {
    %c0_i32 = arith.constant 0 : i32
    %c0_i32_0 = arith.constant 0 : i32
    return %arg0, %c0_i32 : i32, i32
  }
}

</mosaic_0001>

<bundles_post_ra>
// kernel: simplenet_forward.1
= control target key start
LH: loop header
LB: loop body
LE: loop exit
PB: predicated region body
PF: predicated region fallthrough
CT: control target
= control target key end

     0   :  { %vm57_vm0 = vcmask 130048   ;;  %vm175_vm1 = vcmask 261120   ;;  %vm601_vm6 = vcmask 64512   ;;  %s1001_s1 = inlined_call_operand.vmem [shape: bf16[16,32], index: 1, kind: input, shape index: {}]   ;;  %s1002_s0 = inlined_call_operand.vmem [shape: f32[128,16], index: 0, kind: input, shape index: {}]   ;;  %s1003_s2 = inlined_call_operand.vmem [shape: f32[1,32], index: 2, kind: input, shape index: {}]   ;;  %s1004_s3 = inlined_call_operand.vmem [shape: bf16[32,8], index: 3, kind: input, shape index: {}]   ;;  %s1005_s4 = inlined_call_operand.vmem [shape: f32[1,8], index: 4, kind: input, shape index: {}]   ;;  %s1006_s5 = inlined_call_operand.vmem [shape: f32[128,8], index: 5, kind: output, shape index: {}]  }
   0x1   :  { %v650_v0 = vld [vmem:[%s1001_s1] sm:$0xff]  ;;  %v22_v2 = vld [vmem:[%s1002_s0 + $0x8] sm:$0xff]  ;;  %v23_v4 = vld [vmem:[%s1002_s0 + $0x10] sm:$0xff] }
   0x2   :  { %v21_v1 = vld [vmem:[%s1002_s0] sm:$0xff]  ;;  %89 = vmatpush.bf16.msra.mxu0 %v650_v0  ;;  %653 = vmatpush.bf16.msra.mxu3 %v650_v0  ;;  %v24_v5 = vld [vmem:[%s1002_s0 + $0x18] sm:$0xff]  ;;  %v26_v8 = vld [vmem:[%s1002_s0 + $0x28] sm:$0xff] }
   0x3   :  { %v37_v3 = vpack.c.bf16 %v22_v2, %v21_v1  ;;  %v38_v6 = vpack.c.bf16 %v24_v5, %v23_v4  ;;  %v25_v7 = vld [vmem:[%s1002_s0 + $0x20] sm:$0xff]  ;;  %v31_v10 = vld [vmem:[%s1002_s0 + $0x50] sm:$0xff]  ;;  %v32_v11 = vld [vmem:[%s1002_s0 + $0x58] sm:$0xff] }
   0x4   :  { %v39_v9 = vpack.c.bf16 %v26_v8, %v25_v7  ;;  %v42_v12 = vpack.c.bf16 %v32_v11, %v31_v10  ;;  %v27_v13 = vld [vmem:[%s1002_s0 + $0x30] sm:$0xff]  ;;  %v28_v14 = vld [vmem:[%s1002_s0 + $0x38] sm:$0xff]  ;;  %v33_v15 = vld [vmem:[%s1002_s0 + $0x60] sm:$0xff] }
   0x5   :  { %626 = vmatmul.msk.bf16.vlgmr.msra.gmra.mxu0 %vm57_vm0, %v37_v3  ;;  %v34_v16 = vld [vmem:[%s1002_s0 + $0x68] sm:$0xff]  ;;  %v40_v17 = vpack.c.bf16 %v28_v14, %v27_v13  ;;  %v29_v19 = vld [vmem:[%s1002_s0 + $0x40] sm:$0xff]  ;;  %v35_v21 = vld [vmem:[%s1002_s0 + $0x70] sm:$0xff] }
   0x6   :  { %631 = vmatmul.msk.bf16.vlgmr.msra.gmra.mxu3 %vm57_vm0, %v42_v12  ;;  %v43_v18 = vpack.c.bf16 %v34_v16, %v33_v15  ;;  %v30_v20 = vld [vmem:[%s1002_s0 + $0x48] sm:$0xff]  ;;  %v36_v22 = vld [vmem:[%s1002_s0 + $0x78] sm:$0xff]  ;;  %v651_v26 = vld [vmem:[%s1004_s3] sm:$0xff] }
   0x7   :  { %v41_v23 = vpack.c.bf16 %v30_v20, %v29_v19  ;;  %v44_v24 = vpack.c.bf16 %v36_v22, %v35_v21  ;;  %v652_v25 = vld [vmem:[%s1004_s3 + $0x8] sm:$0xff]  ;;  %v656_v28 = vld [vmem:[%s1003_s2] ss:$0 sm:$0xff] }
   0x8   :  { %206 = vmatpush.bf16.msra.mxu1 %v652_v25  ;;  %654 = vmatpush.bf16.msra.mxu2 %v652_v25  ;;  %v831_v20 = vld [vmem:[%s1005_s4] ss:$0 sm:$0xff] }
   0xc   :  { %207 = vmatpush.bf16.msra.mxu1 %v651_v26  ;;  %655 = vmatpush.bf16.msra.mxu2 %v651_v26 }
  0x15   :  { %627 = vmatmul.msk.bf16.gmra.mxu0 %vm57_vm0, %v38_v6 }
  0x16   :  { %632 = vmatmul.msk.bf16.gmra.mxu3 %vm57_vm0, %v43_v18 }
  0x25   :  { %628 = vmatmul.msk.bf16.gmra.mxu0 %vm57_vm0, %v39_v9 }
  0x26   :  { %633 = vmatmul.msk.bf16.gmra.mxu3 %vm57_vm0, %v44_v24 }
  0x35   :  { %629 = vmatmul.msk.bf16.gmra.mxu0 %vm57_vm0, %v40_v17 }
  0x45   :  { %630 = vmatmul.msk.bf16.gmra.mxu0 %vm57_vm0, %v41_v23 }
  0x82   :  { %v91_v27 = vpop.f32.mrf.mxu0 }
  0x83   :  { %v92_v29 = vadd.f32 %v656_v28, %v91_v27 }
  0x85   :  { %v131_v32 = vmax.f32 %v92_v29, 0.0 }
  0x89   :  { %v116_v57 = vpop.f32.mrf.mxu3 }
  0x8a   :  { %v93_v30 = vpop.f32.mrf.mxu0  ;;  %v117_v2 = vadd.f32 %v656_v28, %v116_v57 }
  0x8b   :  { %v94_v31 = vadd.f32 %v656_v28, %v93_v30 }
  0x8c   :  { %v141_v4 = vmax.f32 %v117_v2, 0.0 }
  0x8d   :  { %v132_v33 = vmax.f32 %v94_v31, 0.0 }
  0x8f   :  { %v147_v34 = vpack.c.bf16 %v132_v33, %v131_v32 }
  0x91   :  { %642 = vmatmul.msk.bf16.vlgmr.msra.gmra.mxu1 %vm175_vm1, %v147_v34  ;;  %v118_v61 = vpop.f32.mrf.mxu3 }
  0x92   :  { %v96_v35 = vpop.f32.mrf.mxu0  ;;  %v119_v3 = vadd.f32 %v656_v28, %v118_v61 }
  0x93   :  { %v97_v36 = vadd.f32 %v656_v28, %v96_v35 }
  0x94   :  { %v142_v5 = vmax.f32 %v119_v3, 0.0 }
  0x95   :  { %v133_v39 = vmax.f32 %v97_v36, 0.0 }
  0x96   :  { %v152_v6 = vpack.c.bf16 %v142_v5, %v141_v4 }
  0x99   :  { %v121_v1 = vpop.f32.mrf.mxu3 }
  0x9a   :  { %v98_v37 = vpop.f32.mrf.mxu0  ;;  %v122_v8 = vadd.f32 %v656_v28, %v121_v1 }
  0x9b   :  { %v99_v38 = vadd.f32 %v656_v28, %v98_v37 }
  0x9c   :  { %v143_v11 = vmax.f32 %v122_v8, 0.0 }
  0x9d   :  { %v134_v40 = vmax.f32 %v99_v38, 0.0 }
  0x9f   :  { %v148_v41 = vpack.c.bf16 %v134_v40, %v133_v39 }
  0xa1   :  { %643 = vmatmul.msk.bf16.gmra.mxu1 %vm175_vm1, %v148_v41  ;;  %v123_v7 = vpop.f32.mrf.mxu3 }
  0xa2   :  { %v101_v42 = vpop.f32.mrf.mxu0  ;;  %v124_v9 = vadd.f32 %v656_v28, %v123_v7 }
  0xa3   :  { %v102_v43 = vadd.f32 %v656_v28, %v101_v42 }
  0xa4   :  { %v144_v12 = vmax.f32 %v124_v9, 0.0 }
  0xa5   :  { %v135_v46 = vmax.f32 %v102_v43, 0.0 }
  0xa6   :  { %v153_v13 = vpack.c.bf16 %v144_v12, %v143_v11 }
  0xa9   :  { %v126_v10 = vpop.f32.mrf.mxu3 }
  0xaa   :  { %v103_v44 = vpop.f32.mrf.mxu0  ;;  %v127_v15 = vadd.f32 %v656_v28, %v126_v10 }
  0xab   :  { %v104_v45 = vadd.f32 %v656_v28, %v103_v44 }
  0xac   :  { %v145_v17 = vmax.f32 %v127_v15, 0.0 }
  0xad   :  { %v136_v47 = vmax.f32 %v104_v45, 0.0 }
  0xaf   :  { %v149_v48 = vpack.c.bf16 %v136_v47, %v135_v46 }
  0xb1   :  { %644 = vmatmul.msk.bf16.gmra.mxu1 %vm175_vm1, %v149_v48  ;;  %v128_v14 = vpop.f32.mrf.mxu3 }
  0xb2   :  { %v106_v49 = vpop.f32.mrf.mxu0  ;;  %v129_v16 = vadd.f32 %v656_v28, %v128_v14 }
  0xb3   :  { %v107_v50 = vadd.f32 %v656_v28, %v106_v49 }
  0xb4   :  { %v146_v18 = vmax.f32 %v129_v16, 0.0 }
  0xb5   :  { %v137_v53 = vmax.f32 %v107_v50, 0.0 }
  0xb6   :  { %v154_v19 = vpack.c.bf16 %v146_v18, %v145_v17 }
  0xba   :  { %v108_v51 = vpop.f32.mrf.mxu0 }
  0xbb   :  { %v109_v52 = vadd.f32 %v656_v28, %v108_v51 }
  0xbd   :  { %v138_v54 = vmax.f32 %v109_v52, 0.0 }
  0xbf   :  { %v150_v55 = vpack.c.bf16 %v138_v54, %v137_v53 }
  0xc1   :  { %645 = vmatmul.msk.bf16.gmra.mxu1 %vm175_vm1, %v150_v55 }
  0xc2   :  { %v111_v56 = vpop.f32.mrf.mxu0 }
  0xc3   :  { %v112_v58 = vadd.f32 %v656_v28, %v111_v56 }
  0xc5   :  { %v139_v62 = vmax.f32 %v112_v58, 0.0 }
  0xca   :  { %v113_v59 = vpop.f32.mrf.mxu0 }
  0xcb   :  { %v114_v60 = vadd.f32 %v656_v28, %v113_v59 }
  0xcd   :  { %v140_v63 = vmax.f32 %v114_v60, 0.0 }
  0xcf   :  { %v151_v0 = vpack.c.bf16 %v140_v63, %v139_v62 }
  0xd1   :  { %646 = vmatmul.msk.bf16.vlgmr.msra.gmra.mxu2 %vm175_vm1, %v151_v0 }
  0xe1   :  { %647 = vmatmul.msk.bf16.gmra.mxu2 %vm175_vm1, %v152_v6 }
  0xf1   :  { %648 = vmatmul.msk.bf16.gmra.mxu2 %vm175_vm1, %v153_v13 }
 0x101   :  { %649 = vmatmul.msk.bf16.gmra.mxu2 %vm175_vm1, %v154_v19 }
 0x10e   :  { %v209_v21 = vpop.f32.mrf.mxu1 }
 0x10f   :  { %v210_v22 = vadd.f32 %v831_v20, %v209_v21 }
 0x111   :  { %v249_v23 = vand.u32 2147483647, %v210_v22  ;;  %vm553_vm7 = vcmp.ge.f32.partialorder %v210_v22, 0.0 }
 0x113   :  { %v265_v24 = vsub.f32 0.0, %v249_v23 }
 0x115   :  { %v281_v25 = vmul.f32 1.442695, %v265_v24 }
 0x116   :  { %v211_v26 = vpop.f32.mrf.mxu1 }
 0x117   :  { %658 = vpow2.f32 %v281_v25  ;;  %v835_v27 = vadd.f32 %v831_v20, %v211_v26 }
 0x119   :  { %v250_v28 = vand.u32 2147483647, %v835_v27  ;;  %vm554_vm12 = vcmp.ge.f32.partialorder %v835_v27, 0.0 }
 0x11b   :  { %v266_v29 = vsub.f32 0.0, %v250_v28 }
 0x11d   :  { %v659_v30 = vpop.eup %658  ;;  %v283_v31 = vmul.f32 1.442695, %v266_v29 }
 0x11e   :  { %v313_v32 = vadd.f32 1.0, %v659_v30  ;;  %v214_v33 = vpop.f32.mrf.mxu1 }
 0x11f   :  { %660 = vpow2.f32 %v283_v31  ;;  %v839_v34 = vadd.f32 %v831_v20, %v214_v33 }
 0x120   :  { %662 = vrcp.f32 %v313_v32  ;;  %v340_v46 = vand.u32 2147483648, %v313_v32  ;;  %v338_v48 = vand.u32 2147483647, %v313_v32  ;;  %vm334_vm3 = vweird.f32 %v313_v32 }
 0x121   :  { %v251_v35 = vand.u32 2147483647, %v839_v34  ;;  %vm555_vm1 = vcmp.ge.f32.partialorder %v839_v34, 0.0 }
 0x122   :  { %v341_v54 = vor.u32 1.1754944e-38, %v340_v46  ;;  %vm339_vm5 = vcmp.eq.f32.partialorder %v338_v48, 8.507059e+37 }
 0x123   :  { %v267_v36 = vsub.f32 0.0, %v251_v35 }
 0x125   :  { %v661_v37 = vpop.eup %660  ;;  %v285_v38 = vmul.f32 1.442695, %v267_v36 }
 0x126   :  { %v663_v39 = vpop.eup %662  ;;  %v314_v40 = vadd.f32 1.0, %v661_v37  ;;  %v216_v41 = vpop.f32.mrf.mxu1 }
 0x127   :  { %v330_v42 = vmul.f32 %v663_v39, %v313_v32  ;;  %664 = vpow2.f32 %v285_v38  ;;  %v843_v43 = vadd.f32 %v831_v20, %v216_v41  ;;  %vm335_vm2 = vweird.f32 %v663_v39 }
 0x128   :  { %666 = vrcp.f32 %v314_v40  ;;  %vm336_vm4 = vmor %vm334_vm3, %vm335_vm2  ;;  %v352_v63 = vand.u32 2147483647, %v314_v40  ;;  %v354_v0 = vand.u32 2147483648, %v314_v40  ;;  %vm348_vm9 = vweird.f32 %v314_v40 }
 0x129   :  { %v331_v44 = vsub.f32 1.0, %v330_v42  ;;  %v252_v45 = vand.u32 2147483647, %v843_v43 }
 0x12a   :  { %v355_v8 = vor.u32 1.1754944e-38, %v354_v0  ;;  %vm353_vm11 = vcmp.eq.f32.partialorder %v352_v63, 8.507059e+37 }
 0x12b   :  { %v332_v47 = vmul.f32 %v663_v39, %v331_v44  ;;  %v268_v49 = vsub.f32 0.0, %v252_v45 }
 0x12d   :  { %v846_v50 = vpop.eup %664  ;;  %v333_v51 = vadd.f32 %v663_v39, %v332_v47  ;;  %v287_v52 = vmul.f32 1.442695, %v268_v49 }
 0x12e   :  { %v667_v53 = vpop.eup %666  ;;  %v315_v55 = vadd.f32 1.0, %v846_v50  ;;  %v219_v56 = vpop.f32.mrf.mxu1 }
 0x12f   :  { %v337_v57 = vsel %vm336_vm4, %v663_v39, %v333_v51  ;;  %v344_v58 = vmul.f32 %v667_v53, %v314_v40  ;;  %668 = vpow2.f32 %v287_v52  ;;  %v850_v62 = vadd.f32 %v831_v20, %v219_v56 }
 0x130   :  { %v342_v59 = vsel %vm339_vm5, %v341_v54, %v337_v57  ;;  %670 = vrcp.f32 %v315_v55  ;;  %vm349_vm8 = vweird.f32 %v667_v53  ;;  %v368_v17 = vand.u32 2147483648, %v315_v55 }
 0x131   :  { %v569_v60 = vmul.f32 %v659_v30, %v342_v59  ;;  %v345_v61 = vsub.f32 1.0, %v344_v58  ;;  %v253_v3 = vand.u32 2147483647, %v850_v62  ;;  %vm350_vm10 = vmor %vm348_vm9, %vm349_vm8  ;;  %v366_v22 = vand.u32 2147483647, %v315_v55 }
 0x132   :  { %vm362_vm14 = vweird.f32 %v315_v55  ;;  %v369_v26 = vor.u32 1.1754944e-38, %v368_v17 }
 0x133   :  { %v585_v1 = vsel %vm553_vm7, %v342_v59, %v569_v60  ;;  %v346_v2 = vmul.f32 %v667_v53, %v345_v61  ;;  %v269_v6 = vsub.f32 0.0, %v253_v3  ;;  %vm367_vm0 = vcmp.eq.f32.partialorder %v366_v22, 8.507059e+37 }
 0x134   :  { %602 = vst.msk [vmem:[%s1006_s5] sm:$0xff] %vm601_vm6, %v585_v1  ;;  %vm556_vm7 = vcmp.ge.f32.partialorder %v843_v43, 0.0 }
 0x135   :  { %v857_v4 = vpop.eup %668  ;;  %v347_v5 = vadd.f32 %v667_v53, %v346_v2  ;;  %v289_v13 = vmul.f32 1.442695, %v269_v6 }
 0x136   :  { %v671_v7 = vpop.eup %670  ;;  %v316_v9 = vadd.f32 1.0, %v857_v4  ;;  %v221_v10 = vpop.f32.mrf.mxu1 }
 0x137   :  { %v351_v11 = vsel %vm350_vm10, %v667_v53, %v347_v5  ;;  %v358_v12 = vmul.f32 %v671_v7, %v315_v55  ;;  %v862_v18 = vadd.f32 %v831_v20, %v221_v10  ;;  %vm363_vm13 = vweird.f32 %v671_v7 }
 0x138   :  { %v356_v14 = vsel %vm353_vm11, %v355_v8, %v351_v11  ;;  %672 = vrcp.f32 %v316_v9  ;;  %vm364_vm15 = vmor %vm362_vm14, %vm363_vm13  ;;  %v380_v40 = vand.u32 2147483647, %v316_v9  ;;  %v382_v41 = vand.u32 2147483648, %v316_v9 }
 0x139   :  { %v570_v15 = vmul.f32 %v661_v37, %v356_v14  ;;  %v359_v16 = vsub.f32 1.0, %v358_v12  ;;  %674 = vpow2.f32 %v289_v13  ;;  %v254_v23 = vand.u32 2147483647, %v862_v18 }
 0x13a   :  { %vm376_vm3 = vweird.f32 %v316_v9  ;;  %v383_v47 = vor.u32 1.1754944e-38, %v382_v41  ;;  %vm381_vm5 = vcmp.eq.f32.partialorder %v380_v40, 8.507059e+37 }
 0x13b   :  { %v586_v19 = vsel %vm554_vm12, %v356_v14, %v570_v15  ;;  %v360_v21 = vmul.f32 %v671_v7, %v359_v16  ;;  %v270_v27 = vsub.f32 0.0, %v254_v23  ;;  %vm557_vm12 = vcmp.ge.f32.partialorder %v850_v62, 0.0 }
 0x13c   :  { %603 = vst.msk [vmem:[%s1006_s5 + $0x8] sm:$0xff] %vm601_vm6, %v586_v19 }
 0x13d   :  { %v361_v24 = vadd.f32 %v671_v7, %v360_v21  ;;  %v291_v36 = vmul.f32 1.442695, %v270_v27 }
 0x13e   :  { %v673_v25 = vpop.eup %672  ;;  %v224_v28 = vpop.f32.mrf.mxu1 }
 0x13f   :  { %v675_v29 = vpop.eup %674  ;;  %v365_v30 = vsel %vm364_vm15, %v671_v7, %v361_v24  ;;  %v372_v31 = vmul.f32 %v673_v25, %v316_v9  ;;  %v870_v32 = vadd.f32 %v831_v20, %v224_v28  ;;  %vm377_vm2 = vweird.f32 %v673_v25 }
 0x140   :  { %v370_v33 = vsel %vm367_vm0, %v369_v26, %v365_v30  ;;  %v317_v35 = vadd.f32 1.0, %v675_v29  ;;  %vm378_vm4 = vmor %vm376_vm3, %vm377_vm2  ;;  %vm558_vm3 = vcmp.ge.f32.partialorder %v862_v18, 0.0 }
 0x141   :  { %v571_v37 = vmul.f32 %v846_v50, %v370_v33  ;;  %v373_v38 = vsub.f32 1.0, %v372_v31  ;;  %v255_v39 = vand.u32 2147483647, %v870_v32 }
 0x142   :  { %676 = vrcp.f32 %v317_v35  ;;  %v396_v61 = vand.u32 2147483648, %v317_v35  ;;  %v394_v1 = vand.u32 2147483647, %v317_v35  ;;  %vm390_vm9 = vweird.f32 %v317_v35 }
 0x143   :  { %v587_v42 = vsel %vm555_vm1, %v370_v33, %v571_v37  ;;  %v374_v44 = vmul.f32 %v673_v25, %v373_v38  ;;  %678 = vpow2.f32 %v291_v36  ;;  %v271_v45 = vsub.f32 0.0, %v255_v39 }
 0x144   :  { %604 = vst.msk [vmem:[%s1006_s5 + $0x10] sm:$0xff] %vm601_vm6, %v587_v42  ;;  %vm395_vm11 = vcmp.eq.f32.partialorder %v394_v1, 8.507059e+37 }
 0x145   :  { %v375_v46 = vadd.f32 %v673_v25, %v374_v44  ;;  %v293_v34 = vmul.f32 1.442695, %v271_v45 }
 0x146   :  { %v226_v48 = vpop.f32.mrf.mxu1 }
 0x147   :  { %v379_v49 = vsel %vm378_vm4, %v673_v25, %v375_v46  ;;  %680 = vpow2.f32 %v293_v34  ;;  %v880_v50 = vadd.f32 %v831_v20, %v226_v48 }
 0x148   :  { %v677_v51 = vpop.eup %676  ;;  %v384_v52 = vsel %vm381_vm5, %v383_v47, %v379_v49 }
 0x149   :  { %v679_v53 = vpop.eup %678  ;;  %v572_v54 = vmul.f32 %v857_v4, %v384_v52  ;;  %v386_v55 = vmul.f32 %v677_v51, %v317_v35  ;;  %v256_v56 = vand.u32 2147483647, %v880_v50  ;;  %vm391_vm8 = vweird.f32 %v677_v51 }
 0x14a   :  { %v318_v57 = vadd.f32 1.0, %v679_v53  ;;  %vm392_vm10 = vmor %vm390_vm9, %vm391_vm8  ;;  %v397_v4 = vor.u32 1.1754944e-38, %v396_v61 }
 0x14b   :  { %v588_v58 = vsel %vm556_vm7, %v384_v52, %v572_v54  ;;  %v387_v59 = vsub.f32 1.0, %v386_v55  ;;  %v272_v60 = vsub.f32 0.0, %v256_v56  ;;  %vm559_vm7 = vcmp.ge.f32.partialorder %v870_v32, 0.0 }
 0x14c   :  { %605 = vst.msk [vmem:[%s1006_s5 + $0x18] sm:$0xff] %vm601_vm6, %v588_v58  ;;  %682 = vrcp.f32 %v318_v57  ;;  %v408_v16 = vand.u32 2147483647, %v318_v57  ;;  %v410_v17 = vand.u32 2147483648, %v318_v57  ;;  %vm404_vm14 = vweird.f32 %v318_v57 }
 0x14d   :  { %v889_v63 = vpop.eup %680  ;;  %v388_v0 = vmul.f32 %v677_v51, %v387_v59  ;;  %v295_v2 = vmul.f32 1.442695, %v272_v60 }
 0x14e   :  { %v319_v3 = vadd.f32 1.0, %v889_v63  ;;  %vm409_vm0 = vcmp.eq.f32.partialorder %v408_v16, 8.507059e+37  ;;  %v411_v26 = vor.u32 1.1754944e-38, %v410_v17 }
 0x14f   :  { %v389_v43 = vadd.f32 %v677_v51, %v388_v0  ;;  %684 = vpow2.f32 %v295_v2 }
 0x150   :  { %686 = vrcp.f32 %v319_v3  ;;  %v422_v27 = vand.u32 2147483647, %v319_v3  ;;  %v424_v28 = vand.u32 2147483648, %v319_v3  ;;  %vm418_vm2 = vweird.f32 %v319_v3 }
 0x151   :  { %v393_v5 = vsel %vm392_vm10, %v677_v51, %v389_v43 }
 0x152   :  { %v683_v6 = vpop.eup %682  ;;  %v398_v7 = vsel %vm395_vm11, %v397_v4, %v393_v5  ;;  %v425_v40 = vor.u32 1.1754944e-38, %v424_v28  ;;  %vm423_vm5 = vcmp.eq.f32.partialorder %v422_v27, 8.507059e+37 }
 0x153   :  { %v573_v8 = vmul.f32 %v675_v29, %v398_v7  ;;  %v400_v9 = vmul.f32 %v683_v6, %v318_v57  ;;  %vm405_vm13 = vweird.f32 %v683_v6 }
 0x154   :  { %v229_v10 = vpop.f32.mrf.mxu2  ;;  %vm406_vm15 = vmor %vm404_vm14, %vm405_vm13 }
 0x155   :  { %v893_v11 = vpop.eup %684  ;;  %v589_v12 = vsel %vm557_vm12, %v398_v7, %v573_v8  ;;  %v401_v13 = vsub.f32 1.0, %v400_v9  ;;  %v896_v14 = vadd.f32 %v831_v20, %v229_v10  ;;  %vm560_vm12 = vcmp.ge.f32.partialorder %v880_v50, 0.0 }
 0x156   :  { %v687_v15 = vpop.eup %686  ;;  %606 = vst.msk [vmem:[%s1006_s5 + $0x20] sm:$0xff] %vm601_vm6, %v589_v12  ;;  %v320_v19 = vadd.f32 1.0, %v893_v11 }
 0x157   :  { %v402_v21 = vmul.f32 %v683_v6, %v401_v13  ;;  %v414_v62 = vmul.f32 %v687_v15, %v319_v3  ;;  %v257_v22 = vand.u32 2147483647, %v896_v14  ;;  %vm419_vm1 = vweird.f32 %v687_v15 }
 0x158   :  { %688 = vrcp.f32 %v320_v19  ;;  %vm420_vm4 = vmor %vm418_vm2, %vm419_vm1  ;;  %v438_v18 = vand.u32 2147483648, %v320_v19  ;;  %vm432_vm9 = vweird.f32 %v320_v19  ;;  %vm561_vm1 = vcmp.ge.f32.partialorder %v896_v14, 0.0 }
 0x159   :  { %v403_v23 = vadd.f32 %v683_v6, %v402_v21  ;;  %v415_v24 = vsub.f32 1.0, %v414_v62  ;;  %v273_v25 = vsub.f32 0.0, %v257_v22 }
 0x15a   :  { %v439_v32 = vor.u32 1.1754944e-38, %v438_v18 }
 0x15b   :  { %v407_v29 = vsel %vm406_vm15, %v683_v6, %v403_v23  ;;  %v416_v30 = vmul.f32 %v687_v15, %v415_v24  ;;  %v297_v31 = vmul.f32 1.442695, %v273_v25 }
 0x15c   :  { %v412_v33 = vsel %vm409_vm0, %v411_v26, %v407_v29  ;;  %v231_v35 = vpop.f32.mrf.mxu2 }
 0x15d   :  { %v574_v36 = vmul.f32 %v679_v53, %v412_v33  ;;  %v417_v37 = vadd.f32 %v687_v15, %v416_v30  ;;  %690 = vpow2.f32 %v297_v31  ;;  %v905_v38 = vadd.f32 %v831_v20, %v231_v35 }
 0x15e   :  { %v689_v39 = vpop.eup %688  ;;  %v436_v53 = vand.u32 2147483647, %v320_v19 }
 0x15f   :  { %v590_v41 = vsel %vm558_vm3, %v412_v33, %v574_v36  ;;  %v421_v42 = vsel %vm420_vm4, %v687_v15, %v417_v37  ;;  %v428_v44 = vmul.f32 %v689_v39, %v320_v19  ;;  %v258_v46 = vand.u32 2147483647, %v905_v38 }
 0x160   :  { %607 = vst.msk [vmem:[%s1006_s5 + $0x28] sm:$0xff] %vm601_vm6, %v590_v41  ;;  %v426_v45 = vsel %vm423_vm5, %v425_v40, %v421_v42  ;;  %vm433_vm8 = vweird.f32 %v689_v39  ;;  %vm437_vm11 = vcmp.eq.f32.partialorder %v436_v53, 8.507059e+37 }
 0x161   :  { %v575_v34 = vmul.f32 %v889_v63, %v426_v45  ;;  %v429_v47 = vsub.f32 1.0, %v428_v44  ;;  %v274_v48 = vsub.f32 0.0, %v258_v46  ;;  %vm434_vm10 = vmor %vm432_vm9, %vm433_vm8  ;;  %vm562_vm8 = vcmp.ge.f32.partialorder %v905_v38, 0.0 }
 0x163   :  { %v691_v49 = vpop.eup %690  ;;  %v591_v51 = vsel %vm559_vm7, %v426_v45, %v575_v34  ;;  %v430_v52 = vmul.f32 %v689_v39, %v429_v47  ;;  %v299_v55 = vmul.f32 1.442695, %v274_v48 }
 0x164   :  { %608 = vst.msk [vmem:[%s1006_s5 + $0x30] sm:$0xff] %vm601_vm6, %v591_v51  ;;  %v321_v54 = vadd.f32 1.0, %v691_v49  ;;  %v234_v56 = vpop.f32.mrf.mxu2 }
 0x165   :  { %v431_v57 = vadd.f32 %v689_v39, %v430_v52  ;;  %v920_v58 = vadd.f32 %v831_v20, %v234_v56 }
 0x166   :  { %692 = vrcp.f32 %v321_v54  ;;  %v452_v50 = vand.u32 2147483648, %v321_v54  ;;  %vm446_vm14 = vweird.f32 %v321_v54 }
 0x167   :  { %v435_v59 = vsel %vm434_vm10, %v689_v39, %v431_v57  ;;  %694 = vpow2.f32 %v299_v55  ;;  %v259_v60 = vand.u32 2147483647, %v920_v58 }
 0x168   :  { %v440_v61 = vsel %vm437_vm11, %v439_v32, %v435_v59  ;;  %v453_v17 = vor.u32 1.1754944e-38, %v452_v50 }
 0x169   :  { %v576_v63 = vmul.f32 %v893_v11, %v440_v61  ;;  %v275_v0 = vsub.f32 0.0, %v259_v60  ;;  %v450_v11 = vand.u32 2147483647, %v321_v54 }
 0x16b   :  { %v592_v1 = vsel %vm560_vm12, %v440_v61, %v576_v63  ;;  %v301_v2 = vmul.f32 1.442695, %v275_v0  ;;  %vm451_vm0 = vcmp.eq.f32.partialorder %v450_v11, 8.507059e+37  ;;  %vm563_vm12 = vcmp.ge.f32.partialorder %v920_v58, 0.0 }
 0x16c   :  { %v693_v3 = vpop.eup %692  ;;  %609 = vst.msk [vmem:[%s1006_s5 + $0x38] sm:$0xff] %vm601_vm6, %v592_v1  ;;  %v236_v43 = vpop.f32.mrf.mxu2 }
 0x16d   :  { %v695_v4 = vpop.eup %694  ;;  %v442_v5 = vmul.f32 %v693_v3, %v321_v54  ;;  %696 = vpow2.f32 %v301_v2  ;;  %v930_v6 = vadd.f32 %v831_v20, %v236_v43  ;;  %vm447_vm13 = vweird.f32 %v693_v3 }
 0x16e   :  { %v322_v7 = vadd.f32 1.0, %v695_v4  ;;  %vm448_vm15 = vmor %vm446_vm14, %vm447_vm13 }
 0x16f   :  { %v443_v8 = vsub.f32 1.0, %v442_v5  ;;  %v260_v9 = vand.u32 2147483647, %v930_v6 }
 0x170   :  { %698 = vrcp.f32 %v322_v7  ;;  %v464_v30 = vand.u32 2147483647, %v322_v7  ;;  %v466_v31 = vand.u32 2147483648, %v322_v7  ;;  %vm460_vm3 = vweird.f32 %v322_v7 }
 0x171   :  { %v444_v10 = vmul.f32 %v693_v3, %v443_v8  ;;  %v276_v12 = vsub.f32 0.0, %v260_v9 }
 0x172   :  { %vm465_vm5 = vcmp.eq.f32.partialorder %v464_v30, 8.507059e+37  ;;  %v467_v45 = vor.u32 1.1754944e-38, %v466_v31 }
 0x173   :  { %v933_v13 = vpop.eup %696  ;;  %v445_v15 = vadd.f32 %v693_v3, %v444_v10  ;;  %v303_v16 = vmul.f32 1.442695, %v276_v12 }
 0x174   :  { %v323_v19 = vadd.f32 1.0, %v933_v13  ;;  %v239_v21 = vpop.f32.mrf.mxu2 }
 0x175   :  { %v449_v62 = vsel %vm448_vm15, %v693_v3, %v445_v15  ;;  %700 = vpow2.f32 %v303_v16  ;;  %v937_v22 = vadd.f32 %v831_v20, %v239_v21 }
 0x176   :  { %v699_v23 = vpop.eup %698  ;;  %v454_v24 = vsel %vm451_vm0, %v453_v17, %v449_v62  ;;  %702 = vrcp.f32 %v323_v19  ;;  %v478_v48 = vand.u32 2147483647, %v323_v19  ;;  %vm474_vm9 = vweird.f32 %v323_v19 }
 0x177   :  { %v577_v25 = vmul.f32 %v691_v49, %v454_v24  ;;  %v456_v26 = vmul.f32 %v699_v23, %v322_v7  ;;  %v261_v27 = vand.u32 2147483647, %v937_v22  ;;  %vm461_vm2 = vweird.f32 %v699_v23 }
 0x178   :  { %vm462_vm4 = vmor %vm460_vm3, %vm461_vm2  ;;  %v480_v49 = vand.u32 2147483648, %v323_v19  ;;  %vm479_vm11 = vcmp.eq.f32.partialorder %v478_v48, 8.507059e+37 }
 0x179   :  { %v593_v28 = vsel %vm561_vm1, %v454_v24, %v577_v25  ;;  %v457_v29 = vsub.f32 1.0, %v456_v26  ;;  %v277_v33 = vsub.f32 0.0, %v261_v27  ;;  %vm564_vm1 = vcmp.ge.f32.partialorder %v930_v6, 0.0 }
 0x17a   :  { %610 = vst.msk [vmem:[%s1006_s5 + $0x40] sm:$0xff] %vm601_vm6, %v593_v28  ;;  %v481_v32 = vor.u32 1.1754944e-38, %v480_v49 }
 0x17b   :  { %v945_v35 = vpop.eup %700  ;;  %v458_v36 = vmul.f32 %v699_v23, %v457_v29  ;;  %v305_v14 = vmul.f32 1.442695, %v277_v33 }
 0x17c   :  { %v703_v37 = vpop.eup %702  ;;  %v324_v39 = vadd.f32 1.0, %v945_v35  ;;  %v241_v40 = vpop.f32.mrf.mxu2 }
 0x17d   :  { %v459_v41 = vadd.f32 %v699_v23, %v458_v36  ;;  %v470_v42 = vmul.f32 %v703_v37, %v323_v19  ;;  %v949_v44 = vadd.f32 %v831_v20, %v241_v40  ;;  %vm475_vm7 = vweird.f32 %v703_v37 }
 0x17e   :  { %704 = vrcp.f32 %v324_v39  ;;  %vm476_vm10 = vmor %vm474_vm9, %vm475_vm7  ;;  %v492_v43 = vand.u32 2147483647, %v324_v39  ;;  %vm488_vm14 = vweird.f32 %v324_v39 }
 0x17f   :  { %v463_v46 = vsel %vm462_vm4, %v699_v23, %v459_v41  ;;  %v471_v34 = vsub.f32 1.0, %v470_v42  ;;  %706 = vpow2.f32 %v305_v14  ;;  %v262_v47 = vand.u32 2147483647, %v949_v44 }
 0x180   :  { %v468_v18 = vsel %vm465_vm5, %v467_v45, %v463_v46  ;;  %vm493_vm0 = vcmp.eq.f32.partialorder %v492_v43, 8.507059e+37 }
 0x181   :  { %v578_v51 = vmul.f32 %v695_v4, %v468_v18  ;;  %v472_v52 = vmul.f32 %v703_v37, %v471_v34  ;;  %v278_v53 = vsub.f32 0.0, %v262_v47  ;;  %v494_v4 = vand.u32 2147483648, %v324_v39 }
 0x183   :  { %v594_v54 = vsel %vm562_vm8, %v468_v18, %v578_v51  ;;  %v473_v55 = vadd.f32 %v703_v37, %v472_v52  ;;  %v307_v56 = vmul.f32 1.442695, %v278_v53  ;;  %v495_v11 = vor.u32 1.1754944e-38, %v494_v4 }
 0x184   :  { %v705_v57 = vpop.eup %704  ;;  %611 = vst.msk [vmem:[%s1006_s5 + $0x48] sm:$0xff] %vm601_vm6, %v594_v54  ;;  %v244_v59 = vpop.f32.mrf.mxu2  ;;  %vm565_vm8 = vcmp.ge.f32.partialorder %v937_v22, 0.0 }
 0x185   :  { %v957_v60 = vpop.eup %706  ;;  %v477_v61 = vsel %vm476_vm10, %v703_v37, %v473_v55  ;;  %v484_v63 = vmul.f32 %v705_v57, %v324_v39  ;;  %708 = vpow2.f32 %v307_v56  ;;  %v961_v1 = vadd.f32 %v831_v20, %v244_v59 }
 0x186   :  { %v482_v38 = vsel %vm479_vm11, %v481_v32, %v477_v61  ;;  %v325_v0 = vadd.f32 1.0, %v957_v60  ;;  %vm489_vm13 = vweird.f32 %v705_v57 }
 0x187   :  { %v579_v2 = vmul.f32 %v933_v13, %v482_v38  ;;  %v485_v3 = vsub.f32 1.0, %v484_v63  ;;  %v263_v8 = vand.u32 2147483647, %v961_v1  ;;  %vm490_vm15 = vmor %vm488_vm14, %vm489_vm13 }
 0x188   :  { %710 = vrcp.f32 %v325_v0  ;;  %v506_v28 = vand.u32 2147483647, %v325_v0  ;;  %vm502_vm3 = vweird.f32 %v325_v0 }
 0x189   :  { %v595_v5 = vsel %vm563_vm12, %v482_v38, %v579_v2  ;;  %v486_v7 = vmul.f32 %v705_v57, %v485_v3  ;;  %v279_v10 = vsub.f32 0.0, %v263_v8  ;;  %vm566_vm12 = vcmp.ge.f32.partialorder %v949_v44, 0.0 }
 0x18a   :  { %612 = vst.msk [vmem:[%s1006_s5 + $0x50] sm:$0xff] %vm601_vm6, %v595_v5  ;;  %vm507_vm5 = vcmp.eq.f32.partialorder %v506_v28, 8.507059e+37 }
 0x18b   :  { %v709_v9 = vpop.eup %708  ;;  %v487_v50 = vadd.f32 %v705_v57, %v486_v7  ;;  %v309_v15 = vmul.f32 1.442695, %v279_v10 }
 0x18c   :  { %v326_v58 = vadd.f32 1.0, %v709_v9  ;;  %v246_v12 = vpop.f32.mrf.mxu2 }
 0x18d   :  { %v491_v13 = vsel %vm490_vm15, %v705_v57, %v487_v50  ;;  %v971_v16 = vadd.f32 %v831_v20, %v246_v12  ;;  %v508_v20 = vand.u32 2147483648, %v325_v0 }
 0x18e   :  { %v711_v17 = vpop.eup %710  ;;  %v496_v19 = vsel %vm493_vm0, %v495_v11, %v491_v13  ;;  %712 = vrcp.f32 %v326_v58  ;;  %v520_v40 = vand.u32 2147483647, %v326_v58  ;;  %v522_v41 = vand.u32 2147483648, %v326_v58 }
 0x18f   :  { %v580_v21 = vmul.f32 %v945_v35, %v496_v19  ;;  %v498_v62 = vmul.f32 %v711_v17, %v325_v0  ;;  %714 = vpow2.f32 %v309_v15  ;;  %v264_v23 = vand.u32 2147483647, %v971_v16 }
 0x190   :  { %vm503_vm2 = vweird.f32 %v711_v17  ;;  %v509_v35 = vor.u32 1.1754944e-38, %v508_v20  ;;  %vm516_vm9 = vweird.f32 %v326_v58  ;;  %v523_v18 = vor.u32 1.1754944e-38, %v522_v41 }
 0x191   :  { %v596_v24 = vsel %vm564_vm1, %v496_v19, %v580_v21  ;;  %v499_v25 = vsub.f32 1.0, %v498_v62  ;;  %v280_v26 = vsub.f32 0.0, %v264_v23  ;;  %vm504_vm4 = vmor %vm502_vm3, %vm503_vm2  ;;  %vm521_vm11 = vcmp.eq.f32.partialorder %v520_v40, 8.507059e+37 }
 0x192   :  { %613 = vst.msk [vmem:[%s1006_s5 + $0x58] sm:$0xff] %vm601_vm6, %v596_v24  ;;  %vm567_vm2 = vcmp.ge.f32.partialorder %v961_v1, 0.0 }
 0x193   :  { %v500_v27 = vmul.f32 %v711_v17, %v499_v25  ;;  %v311_v30 = vmul.f32 1.442695, %v280_v26 }
 0x194   :  { %v713_v29 = vpop.eup %712 }
 0x195   :  { %v501_v31 = vadd.f32 %v711_v17, %v500_v27  ;;  %v512_v6 = vmul.f32 %v713_v29, %v326_v58  ;;  %v715_v33 = vpop.eup %714  ;;  %716 = vpow2.f32 %v311_v30  ;;  %vm517_vm7 = vweird.f32 %v713_v29 }
 0x196   :  { %v327_v39 = vadd.f32 1.0, %v715_v33  ;;  %vm518_vm10 = vmor %vm516_vm9, %vm517_vm7  ;;  %vm568_vm7 = vcmp.ge.f32.partialorder %v971_v16, 0.0 }
 0x197   :  { %v505_v36 = vsel %vm504_vm4, %v711_v17, %v501_v31  ;;  %v513_v37 = vsub.f32 1.0, %v512_v6 }
 0x198   :  { %v510_v14 = vsel %vm507_vm5, %v509_v35, %v505_v36  ;;  %718 = vrcp.f32 %v327_v39  ;;  %v536_v56 = vand.u32 2147483648, %v327_v39  ;;  %v534_v32 = vand.u32 2147483647, %v327_v39 }
 0x199   :  { %v581_v42 = vmul.f32 %v957_v60, %v510_v14  ;;  %v514_v45 = vmul.f32 %v713_v29, %v513_v37  ;;  %vm530_vm14 = vweird.f32 %v327_v39 }
 0x19a   :  { %v537_v63 = vor.u32 1.1754944e-38, %v536_v56  ;;  %vm535_vm0 = vcmp.eq.f32.partialorder %v534_v32, 8.507059e+37 }
 0x19b   :  { %v597_v46 = vsel %vm565_vm8, %v510_v14, %v581_v42  ;;  %v515_v34 = vadd.f32 %v713_v29, %v514_v45  ;;  %v717_v47 = vpop.eup %716 }
 0x19c   :  { %614 = vst.msk [vmem:[%s1006_s5 + $0x60] sm:$0xff] %vm601_vm6, %v597_v46  ;;  %v328_v49 = vadd.f32 1.0, %v717_v47 }
 0x19d   :  { %v519_v48 = vsel %vm518_vm10, %v713_v29, %v515_v34 }
 0x19e   :  { %v524_v51 = vsel %vm521_vm11, %v523_v18, %v519_v48  ;;  %v719_v52 = vpop.eup %718  ;;  %720 = vrcp.f32 %v328_v49  ;;  %v550_v2 = vand.u32 2147483648, %v328_v49  ;;  %v548_v4 = vand.u32 2147483647, %v328_v49 }
 0x19f   :  { %v582_v53 = vmul.f32 %v709_v9, %v524_v51  ;;  %v526_v22 = vmul.f32 %v719_v52, %v327_v39  ;;  %vm531_vm13 = vweird.f32 %v719_v52  ;;  %vm544_vm3 = vweird.f32 %v328_v49 }
 0x1a0   :  { %vm532_vm15 = vmor %vm530_vm14, %vm531_vm13  ;;  %v551_v8 = vor.u32 1.1754944e-38, %v550_v2  ;;  %vm549_vm5 = vcmp.eq.f32.partialorder %v548_v4, 8.507059e+37 }
 0x1a1   :  { %v598_v54 = vsel %vm566_vm12, %v524_v51, %v582_v53  ;;  %v527_v55 = vsub.f32 1.0, %v526_v22 }
 0x1a2   :  { %615 = vst.msk [vmem:[%s1006_s5 + $0x68] sm:$0xff] %vm601_vm6, %v598_v54 }
 0x1a3   :  { %v528_v57 = vmul.f32 %v719_v52, %v527_v55 }
 0x1a4   :  { %v721_v59 = vpop.eup %720 }
 0x1a5   :  { %v529_v60 = vadd.f32 %v719_v52, %v528_v57  ;;  %v540_v61 = vmul.f32 %v721_v59, %v328_v49  ;;  %vm545_vm1 = vweird.f32 %v721_v59 }
 0x1a6   :  { %vm546_vm4 = vmor %vm544_vm3, %vm545_vm1 }
 0x1a7   :  { %v533_v38 = vsel %vm532_vm15, %v719_v52, %v529_v60  ;;  %v541_v44 = vsub.f32 1.0, %v540_v61 }
 0x1a8   :  { %v538_v0 = vsel %vm535_vm0, %v537_v63, %v533_v38 }
 0x1a9   :  { %v583_v3 = vmul.f32 %v715_v33, %v538_v0  ;;  %v542_v43 = vmul.f32 %v721_v59, %v541_v44 }
 0x1ab   :  { %v599_v5 = vsel %vm567_vm2, %v538_v0, %v583_v3  ;;  %v543_v7 = vadd.f32 %v721_v59, %v542_v43 }
 0x1ac   :  { %616 = vst.msk [vmem:[%s1006_s5 + $0x70] sm:$0xff] %vm601_vm6, %v599_v5 }
 0x1ad   :  { %v547_v9 = vsel %vm546_vm4, %v721_v59, %v543_v7 }
 0x1ae   :  { %v552_v50 = vsel %vm549_vm5, %v551_v8, %v547_v9 }
 0x1af   :  { %v584_v10 = vmul.f32 %v717_v47, %v552_v50 }
 0x1b1   :  { %v600_v11 = vsel %vm568_vm7, %v552_v50, %v584_v10 }
 0x1b2   :  { %617 = vst.msk [vmem:[%s1006_s5 + $0x78] sm:$0xff] %vm601_vm6, %v600_v11 }

</bundles_post_ra>
